<compile_context>
chip_gen: v7x
topology: tpu7x:2x2x1
jax: 0.10.0
libtpu: 0.0.40
codegen_flags: <defaults>
</compile_context>

<pallas_src>
import jax
import jax.numpy as jnp
from jax.experimental import pallas as pl
from jax.experimental.pallas import tpu as pltpu


def _round_up(x, m):
    return ((x + m - 1) // m) * m


# ----------------------------------------------------------------------------
# Pallas kernel: fused (composed-deconv) matmul + bias, bf16 output
# ----------------------------------------------------------------------------
def _decoder_kernel(x_ref, wt_ref, b_ref, o_ref):
    # x_ref : (1, Cin, ts)      input dtype (f32) -- one chunk of a batch slab
    # wt_ref: (64*Cout, Cin)    bf16              -- composed weight (resident)
    # b_ref : (64*Cout, 1)      f32               -- composed bias (resident)
    # o_ref : (1, 64*Cout, ts)  bf16
    x = x_ref[0].astype(jnp.bfloat16)                                   # (Cin, ts)
    acc = jnp.dot(wt_ref[...], x, preferred_element_type=jnp.float32)  # (cols, ts) f32
    o_ref[0] = (acc + b_ref[...]).astype(o_ref.dtype)


_TS_TARGET = 4096  # spatial tile (multiple of 128); ~10 MiB double-buffered VMEM


def _spatial_tile(hw, n):
    """Pick the spatial tile: full extent for small HW, otherwise a multiple of
    128 capped at _TS_TARGET, with >=2 grid steps when N == 1 (v7x dual-TC)."""
    if hw < 256:
        return hw
    chunks = 2 if n == 1 else 1
    ts = min(_TS_TARGET, _round_up(pl.cdiv(hw, chunks), 128))
    return hw if ts >= hw else ts


def _decoder_matmul(x3, wt_bf16, b_f32):
    n, cin, hw = x3.shape
    cols = wt_bf16.shape[0]
    ts = _spatial_tile(hw, n)
    grid = (n, pl.cdiv(hw, ts))

    cost = pl.CostEstimate(
        flops=2 * n * hw * cin * cols,
        transcendentals=0,
        bytes_accessed=(x3.size * x3.dtype.itemsize
                        + wt_bf16.size * 2
                        + cols * 4
                        + n * cols * hw * 2),
    )

    return pl.pallas_call(
        _decoder_kernel,
        out_shape=jax.ShapeDtypeStruct((n, cols, hw), jnp.bfloat16),
        grid_spec=pltpu.PrefetchScalarGridSpec(
            num_scalar_prefetch=0,
            grid=grid,
            in_specs=[
                pl.BlockSpec((1, cin, ts), lambda bi, sj: (bi, 0, sj)),  # activation
                pl.BlockSpec((cols, cin), lambda bi, sj: (0, 0)),        # weight (resident)
                pl.BlockSpec((cols, 1), lambda bi, sj: (0, 0)),          # bias (resident)
            ],
            out_specs=pl.BlockSpec((1, cols, ts), lambda bi, sj: (bi, 0, sj)),
        ),
        compiler_params=pltpu.CompilerParams(
            dimension_semantics=("parallel", "parallel"),  # both TCs on v7x
            vmem_limit_bytes=32 * 1024 * 1024,             # headroom on v5e (16 MiB default)
        ),
        cost_estimate=cost,
    )(x3, wt_bf16, b_f32)


# ----------------------------------------------------------------------------
# Compose the three k=2,s=2 deconvs into one k=8,s=8 deconv (weights + bias)
# ----------------------------------------------------------------------------
def compose_decoder_params(params):
    """params: [(W1,b1),(W2,b2),(W3,b3)] in PyTorch ConvTranspose2d layout
    Wi: (Cin_i, Cout_i, 2, 2), bi: (Cout_i,).

    Returns:
      wt (64*Cout3, Cin1) bf16, row index = co*64 + dh*8 + dw
      bc (64*Cout3, 1)    f32, same row order
    with dh = 4*p + 2*r + t and dw = 4*q + 2*s + u (layer 1/2/3 kernel offsets)."""
    (w1, b1), (w2, b2), (w3, b3) = params
    c0 = w1.shape[0]
    c3 = w3.shape[1]

    # Composed weight: Wc[c0, c3, dh, dw]
    wc = jnp.einsum("abpq,bcrs,cdtu->adprtqsu", w1, w2, w3).reshape(c0, c3, 8, 8)

    # Composed bias (independent of the layer-1 offsets p, q)
    t1 = jnp.einsum("b,bcrs->crs", b1, w2) + b2[:, None, None]     # (C2, r, s)
    bc_ = jnp.einsum("crs,cdtu->drtsu", t1, w3)                    # (C3, r, t, s, u)
    bc_ = bc_ + b3[:, None, None, None, None]
    bc = jnp.broadcast_to(bc_[:, None, :, :, None, :, :],
                          (c3, 2, 2, 2, 2, 2, 2)).reshape(c3, 8, 8)

    wt = jnp.transpose(wc, (1, 2, 3, 0)).reshape(c3 * 64, c0)       # (co,dh,dw) rows
    return wt.astype(jnp.bfloat16), bc.reshape(c3 * 64, 1).astype(jnp.float32)


# ----------------------------------------------------------------------------
# Decoder forward (NCHW in, NCHW out — matches the PyTorch module)
# ----------------------------------------------------------------------------
def decoder_apply(x_nchw, wt_bf16, b_f32, *, out_dtype=None):
    """Apply the fused decoder. x_nchw: (N, 256, H, W) -> (N, 2, 8H, 8W)."""
    n, cin, h, w = x_nchw.shape
    cols = wt_bf16.shape[0]
    cout = cols // 64
    if out_dtype is None:
        out_dtype = x_nchw.dtype

    x3 = x_nchw.reshape(n, cin, h * w)             # free (row-major collapse)
    yk = _decoder_matmul(x3, wt_bf16, b_f32)       # (N, 64*Cout, H*W) bf16

    # Un-patch: row = co*64 + dh*8 + dw -> out[n, co, 8h+dh, 8w+dw]
    # Single fused bf16 permutation; cast to the requested dtype at the end.
    y = yk.reshape(n, cout, 8, 8, h, w)
    y = jnp.transpose(y, (0, 1, 4, 2, 5, 3)).reshape(n, cout, 8 * h, 8 * w)
    return y.astype(out_dtype)


def decoder_forward(x_nchw, params, *, out_dtype=None):
    """Convenience wrapper: composes params then applies. Prefer composing once
    (outside jit) and calling decoder_apply for repeated inference."""
    wt, b = compose_decoder_params(params)
    return decoder_apply(x_nchw, wt, b, out_dtype=out_dtype)


# ----------------------------------------------------------------------------
# Parameter init (PyTorch ConvTranspose2d layout: (Cin, Cout, 2, 2))
# ----------------------------------------------------------------------------
def init_decoder_params(key):
    shapes = [(256, 128), (128, 16), (16, 2)]
    params = []
    for i, (cin, cout) in enumerate(shapes):
        kw, kb = jax.random.split(jax.random.fold_in(key, i))
        w = jax.random.normal(kw, (cin, cout, 2, 2), jnp.float32) * 0.05
        b = jax.random.normal(kb, (cout,), jnp.float32) * 0.05
        params.append((w, b))
    return params


# ----------------------------------------------------------------------------
# Pure-JAX reference (three sequential ConvTranspose2d, f32) for verification
# ----------------------------------------------------------------------------
def _ref_conv_transpose_2x2(x, weight, bias):
    n, cin, h, w = x.shape
    cout = weight.shape[1]
    out = jnp.zeros((n, cout, 2 * h, 2 * w), jnp.float32)
    for dh in range(2):
        for dw in range(2):
            patch = jnp.einsum("nihw,io->nohw", x, weight[:, :, dh, dw])
            out = out.at[:, :, dh::2, dw::2].set(patch)
    return out + bias[None, :, None, None]


def _ref_decoder(x, params):
    for w, b in params:
        x = _ref_conv_transpose_2x2(x, w, b)
    return x


if __name__ == "__main__":
    key = jax.random.PRNGKey(0)
    k_x, k_p = jax.random.split(key)

    # Small deterministic input; in_channels fixed at 256 by the module spec.
    x = jax.random.normal(k_x, (2, 256, 4, 4), jnp.float32)  # NCHW
    params = init_decoder_params(k_p)

    # Compose the three deconvs ONCE, outside the jitted forward.
    wt, b = compose_decoder_params(params)

    fwd = jax.jit(decoder_apply)
    out = jax.block_until_ready(fwd(x, wt, b))
    assert out.shape == (2, 2, 32, 32), out.shape
    assert out.dtype == x.dtype, out.dtype

    ref = _ref_decoder(x, params)
    max_err = float(jnp.max(jnp.abs(out - ref)))
    # bf16 MXU inputs / bf16 kernel output with f32 accumulation: err ~1e-3
    assert jnp.allclose(out, ref, atol=2e-2, rtol=2e-2), max_err

    print("KERNEL_OK")
</pallas_src>

<mosaic_0001>
module attributes {stable_mosaic.version = 11 : i64} {
  func.func @_decoder_kernel(%arg0: i32, %arg1: i32, %arg2: memref<1x256x16xf32, #tpu.memory_space<vmem>>, %arg3: memref<128x256xbf16, #tpu.memory_space<vmem>>, %arg4: memref<128x1xf32, #tpu.memory_space<vmem>>, %arg5: memref<1x128x16xbf16, #tpu.memory_space<vmem>>) attributes {dimension_semantics = [#tpu.dimension_semantics<parallel>, #tpu.dimension_semantics<parallel>], iteration_bounds = array<i64: 2, 1>, scalar_prefetch = 0 : i64, scratch_operands = 0 : i64, tpu.core_type = #tpu.core_type<tc>, window_params = [{transform_indices = @transform_0, window_bounds = array<i64: 1, 256, 16>}, {pipeline_mode = #tpu.pipeline_mode<synchronous>, transform_indices = @transform_1, window_bounds = array<i64: 128, 256>}, {pipeline_mode = #tpu.pipeline_mode<synchronous>, transform_indices = @transform_2, window_bounds = array<i64: 128, 1>}, {transform_indices = @transform_3, window_bounds = array<i64: 1, 128, 16>}]} {
    %c0 = arith.constant 0 : index
    %c0_0 = arith.constant 0 : index
    %c0_1 = arith.constant 0 : index
    %0 = vector.load %arg2[%c0, %c0_0, %c0_1] : memref<1x256x16xf32, #tpu.memory_space<vmem>>, vector<1x256x16xf32>
    %1 = vector.shape_cast %0 : vector<1x256x16xf32> to vector<256x16xf32>
    %2 = arith.truncf %1 : vector<256x16xf32> to vector<256x16xbf16>
    %c0_2 = arith.constant 0 : index
    %c0_3 = arith.constant 0 : index
    %3 = vector.load %arg3[%c0_2, %c0_3] : memref<128x256xbf16, #tpu.memory_space<vmem>>, vector<128x256xbf16>
    %cst = arith.constant dense<0.000000e+00> : vector<128x16xf32>
    %4 = tpu.matmul %3, %2, %cst {dimension_numbers = #tpu.dot_dimension_numbers<[1], [0], [0], [1], [0, 0, 1, 1], [], []>} : vector<128x256xbf16>, vector<256x16xbf16>, vector<128x16xf32> -> vector<128x16xf32>
    %c0_4 = arith.constant 0 : index
    %c0_5 = arith.constant 0 : index
    %5 = vector.load %arg4[%c0_4, %c0_5] : memref<128x1xf32, #tpu.memory_space<vmem>>, vector<128x1xf32>
    %6 = vector.broadcast %5 : vector<128x1xf32> to vector<128x16xf32>
    %7 = arith.addf %4, %6 : vector<128x16xf32>
    %8 = arith.truncf %7 : vector<128x16xf32> to vector<128x16xbf16>
    %c0_6 = arith.constant 0 : index
    %c0_7 = arith.constant 0 : index
    %c0_8 = arith.constant 0 : index
    %9 = vector.load %arg5[%c0_6, %c0_7, %c0_8] : memref<1x128x16xbf16, #tpu.memory_space<vmem>>, vector<1x128x16xbf16>
    %10 = vector.shape_cast %9 : vector<1x128x16xbf16> to vector<128x16xbf16>
    %11 = vector.shape_cast %8 : vector<128x16xbf16> to vector<1x128x16xbf16>
    tpu.vector_store %arg5[%c0_6, %c0_7, %c0_8], %11 {strides = array<i32>} : memref<1x128x16xbf16, #tpu.memory_space<vmem>>, vector<1x128x16xbf16>,
    return
  }
  func.func @transform_0(%arg0: i32, %arg1: i32) -> (i32, i32, i32) {
    %c0_i32 = arith.constant 0 : i32
    %c0_i32_0 = arith.constant 0 : i32
    return %arg0, %c0_i32, %arg1 : i32, i32, i32
  }
  func.func @transform_1(%arg0: i32, %arg1: i32) -> (i32, i32) {
    %c0_i32 = arith.constant 0 : i32
    %c0_i32_0 = arith.constant 0 : i32
    %c0_i32_1 = arith.constant 0 : i32
    return %c0_i32, %c0_i32_0 : i32, i32
  }
  func.func @transform_2(%arg0: i32, %arg1: i32) -> (i32, i32) {
    %c0_i32 = arith.constant 0 : i32
    %c0_i32_0 = arith.constant 0 : i32
    %c0_i32_1 = arith.constant 0 : i32
    return %c0_i32, %c0_i32_0 : i32, i32
  }
  func.func @transform_3(%arg0: i32, %arg1: i32) -> (i32, i32, i32) {
    %c0_i32 = arith.constant 0 : i32
    %c0_i32_0 = arith.constant 0 : i32
    return %arg0, %c0_i32, %arg1 : i32, i32, i32
  }
}

</mosaic_0001>

<bundles_post_ra>
// kernel: decoder_apply.1
= control target key start
LH: loop header
LB: loop body
LE: loop exit
PB: predicated region body
PF: predicated region fallthrough
CT: control target
= control target key end

     0   :  { %s941_s12 = smov 0   ;;  %s943_s13 = smov 0   ;;  %s1154_s0 = inlined_call_operand.vmem [shape: f32[2,256,16], index: 0, kind: input, shape index: {}]   ;;  %s1155_s1 = inlined_call_operand.vmem [shape: bf16[128,256], index: 1, kind: input, shape index: {}]   ;;  %s1156_s2 = inlined_call_operand.vmem [shape: f32[128,1], index: 2, kind: input, shape index: {}]   ;;  %s1157_s3 = inlined_call_operand.vmem [shape: bf16[2,128,16], index: 3, kind: output, shape index: {}]  }
   0x1   :  { %s945_s14 = smov 0  }
   0x2 LB: > { %s25_s15 = sadd.s32 1, %s914_s13  ;;  %p708_p0 = scmp.ge.s32.totalorder %s918_s14, 1  ;;  %s918_s14 = sphi %s945_s14, %s13_s14   ;;  %s914_s13 = sphi %s943_s13, %s1159_s13   ;;  %s910_s12 = sphi %s941_s12, %s1158_s12  }
   0x3   : > { %p27_p1 = scmp.ge.s32.totalorder %s25_s15, 2  ;;  %p156_p2 = scmp.lt.s32.totalorder %s918_s14, 3 }
   0x5   : > { %s1161_s15 = smov (%p27_p1, %s25_s15), 0  ;;  %p157_p3 = pnand %p708_p0, %p156_p2 }
   0x6   : > { %p186_p4 = scmp.lt.s32.totalorder (!%p157_p3), %s910_s12, 1  ;;  %v874_v0 = vld [vmem:[%s1155_s1 + $0x4] ss:$8 sps:$4 sm:$0xff] (!%p157_p3)   ;;  %v920_v1 = vmov (!%p157_p3), 0   ;;  %v269_v34 = vld [vmem:[%s1156_s2 + $0x10] sm:$0xff] (!%p157_p3)  ;;  %v270_v42 = vld [vmem:[%s1156_s2 + $0x18] sm:$0xff] (!%p157_p3) }
   0x7   : > { %160 = sbr.rel (%p157_p3) target bundleno = 298 (0x12a), region = 32  ;;  %871 = vset.pattern.permute.xlu1 (!%p157_p3), %v920_v1  ;;  %870 = vset.pattern.permute.xlu0 (!%p157_p3), %v920_v1  ;;  %v877_v2 = vld [vmem:[%s1155_s1 + $0x44] ss:$8 sps:$4 sm:$0xff] (!%p157_p3)   ;;  %v274_v56 = vld [vmem:[%s1156_s2 + $0x38] sm:$0xff] (!%p157_p3)  ;;  %v273_v57 = vld [vmem:[%s1156_s2 + $0x30] sm:$0xff] (!%p157_p3)  ;;  %vm604_vm0 = vcmask (!%p157_p3), 125952  }
   0x8   : > { %475 = vmatprep.mubr.bf16.mxu0 (!%p157_p3), %v874_v0  ;;  %507 = vmatprep.mubr.bf16.mxu1 (!%p157_p3), %v877_v2  ;;  %v267_v35 = vld [vmem:[%s1156_s2] sm:$0xff] (!%p157_p3)  ;;  %v268_v43 = vld [vmem:[%s1156_s2 + $0x8] sm:$0xff] (!%p157_p3)  ;;  %v878_v63 = vld [vmem:[%s1155_s1 + $0x14] ss:$8 sps:$4 sm:$0xff] (!%p157_p3)  }
   0x9   : > { %295 = vperm.xlu1 (!%p157_p3), %871, %v269_v34   ;;  %285 = vperm.xlu0 (!%p157_p3), %870, %v267_v35   ;;  %v272_v50 = vld [vmem:[%s1156_s2 + $0x28] sm:$0xff] (!%p157_p3)  ;;  %v271_v51 = vld [vmem:[%s1156_s2 + $0x20] sm:$0xff] (!%p157_p3)  ;;  %v880_v0 = vld [vmem:[%s1155_s1 + $0x54] ss:$8 sps:$4 sm:$0xff] (!%p157_p3)  }
   0xa   : > { %v872_v59 = vld [vmem:[%s1155_s1] ss:$8 sps:$4 sm:$0xff] (!%p157_p3)   ;;  %v278_v1 = vld [vmem:[%s1156_s2 + $0x58] sm:$0xff] (!%p157_p3)  ;;  %v277_v2 = vld [vmem:[%s1156_s2 + $0x50] sm:$0xff] (!%p157_p3) }
   0xb   : > { %v875_v60 = vld [vmem:[%s1155_s1 + $0x40] ss:$8 sps:$4 sm:$0xff] (!%p157_p3)  }
   0xc   : > { %v276_v61 = vld [vmem:[%s1156_s2 + $0x48] sm:$0xff] (!%p157_p3)  ;;  %v275_v62 = vld [vmem:[%s1156_s2 + $0x40] sm:$0xff] (!%p157_p3) }
   0xd   : > { %300 = vperm.xlu1 (!%p157_p3), %871, %v270_v42   ;;  %290 = vperm.xlu0 (!%p157_p3), %870, %v268_v43  }
   0xe   : > { %s1163_s12 = smov (!%p186_p4, %s910_s12), 1 }
   0xf   : > { %s747_s20 = sshll.u32 %s1163_s12, 8  ;;  %s748_s11 = sshll.u32 %s1163_s12, 6 }
  0x10   : > { %s971_s23 = scalar_lea.vmem %s1154_s0, %s747_s20  ;;  %s1107_s18 = scalar_lea.vmem %s1157_s3, %s748_s11 }
  0x11   : > { %v219_v3 = vld [vmem:[%s971_s23 + $0x80] sm:$0xff]  ;;  %v220_v4 = vld [vmem:[%s971_s23 + $0x88] sm:$0xff]  ;;  %v221_v8 = vld [vmem:[%s971_s23 + $0x90] sm:$0xff]  ;;  %310 = vperm.xlu1 %871, %v272_v50   ;;  %305 = vperm.xlu0 %870, %v271_v51  }
  0x12   : > { %v203_v5 = vld [vmem:[%s971_s23] sm:$0xff]  ;;  %v243_v6 = vpack.c.bf16 %v220_v4, %v219_v3  ;;  %v204_v7 = vld [vmem:[%s971_s23 + $0x8] sm:$0xff]  ;;  %v222_v9 = vld [vmem:[%s971_s23 + $0x98] sm:$0xff] }
  0x13   : > { %v235_v10 = vpack.c.bf16 %v204_v7, %v203_v5  ;;  %v244_v11 = vpack.c.bf16 %v222_v9, %v221_v8  ;;  %v205_v12 = vld [vmem:[%s971_s23 + $0x10] sm:$0xff]  ;;  %v206_v13 = vld [vmem:[%s971_s23 + $0x18] sm:$0xff]  ;;  %v223_v14 = vld [vmem:[%s971_s23 + $0xa0] sm:$0xff] }
  0x14   : > { %765 = vmatprep.subr.bf16.mxu0 %v243_v6  ;;  %829 = vmatprep.subr.bf16.mxu1 %v243_v6  ;;  %v224_v15 = vld [vmem:[%s971_s23 + $0xa8] sm:$0xff]  ;;  %v236_v16 = vpack.c.bf16 %v206_v13, %v205_v12  ;;  %v207_v18 = vld [vmem:[%s971_s23 + $0x20] sm:$0xff]  ;;  %v225_v20 = vld [vmem:[%s971_s23 + $0xb0] sm:$0xff] }
  0x15   : > { %766 = vmatpush3.bf16.msra.mxu0 %v235_v10  ;;  %837 = vmatpush3.bf16.msra.mxu1 %v235_v10  ;;  %v245_v17 = vpack.c.bf16 %v224_v15, %v223_v14  ;;  %v208_v19 = vld [vmem:[%s971_s23 + $0x28] sm:$0xff]  ;;  %v226_v21 = vld [vmem:[%s971_s23 + $0xb8] sm:$0xff]  ;;  %v209_v24 = vld [vmem:[%s971_s23 + $0x30] sm:$0xff] }
  0x16   : > { %767 = vmatprep.subr.bf16.mxu0 %v244_v11  ;;  %830 = vmatprep.subr.bf16.mxu1 %v244_v11  ;;  %v237_v22 = vpack.c.bf16 %v208_v19, %v207_v18  ;;  %v246_v23 = vpack.c.bf16 %v226_v21, %v225_v20  ;;  %v210_v25 = vld [vmem:[%s971_s23 + $0x38] sm:$0xff]  ;;  %v227_v26 = vld [vmem:[%s971_s23 + $0xc0] sm:$0xff]  ;;  %v228_v27 = vld [vmem:[%s971_s23 + $0xc8] sm:$0xff] }
  0x17   : > { %v238_v28 = vpack.c.bf16 %v210_v25, %v209_v24  ;;  %v211_v29 = vld [vmem:[%s971_s23 + $0x40] sm:$0xff]  ;;  %v247_v30 = vpack.c.bf16 %v228_v27, %v227_v26  ;;  %v212_v31 = vld [vmem:[%s971_s23 + $0x48] sm:$0xff]  ;;  %v229_v32 = vld [vmem:[%s971_s23 + $0xd0] sm:$0xff]  ;;  %320 = vperm.xlu1 %871, %v274_v56   ;;  %315 = vperm.xlu0 %870, %v273_v57  }
  0x18   : > { %v230_v33 = vld [vmem:[%s971_s23 + $0xd8] sm:$0xff]  ;;  %v239_v36 = vpack.c.bf16 %v212_v31, %v211_v29  ;;  %v213_v38 = vld [vmem:[%s971_s23 + $0x50] sm:$0xff]  ;;  %v231_v40 = vld [vmem:[%s971_s23 + $0xe0] sm:$0xff] }
  0x19   : > { %768 = vmatpush3.bf16.msra.mxu0 %v236_v16  ;;  %838 = vmatpush3.bf16.msra.mxu1 %v236_v16  ;;  %v248_v37 = vpack.c.bf16 %v230_v33, %v229_v32  ;;  %v214_v39 = vld [vmem:[%s971_s23 + $0x58] sm:$0xff]  ;;  %v232_v41 = vld [vmem:[%s971_s23 + $0xe8] sm:$0xff]  ;;  %v215_v46 = vld [vmem:[%s971_s23 + $0x60] sm:$0xff] }
  0x1a   : > { %769 = vmatprep.subr.bf16.mxu0 %v245_v17  ;;  %831 = vmatprep.subr.bf16.mxu1 %v245_v17  ;;  %v240_v44 = vpack.c.bf16 %v214_v39, %v213_v38  ;;  %v249_v45 = vpack.c.bf16 %v232_v41, %v231_v40  ;;  %v216_v47 = vld [vmem:[%s971_s23 + $0x68] sm:$0xff]  ;;  %v233_v48 = vld [vmem:[%s971_s23 + $0xf0] sm:$0xff]  ;;  %v234_v49 = vld [vmem:[%s971_s23 + $0xf8] sm:$0xff] }
  0x1b   : > { %v241_v52 = vpack.c.bf16 %v216_v47, %v215_v46  ;;  %v250_v53 = vpack.c.bf16 %v234_v49, %v233_v48  ;;  %v217_v54 = vld [vmem:[%s971_s23 + $0x70] sm:$0xff]  ;;  %v218_v55 = vld [vmem:[%s971_s23 + $0x78] sm:$0xff]  ;;  %330 = vperm.xlu1 %871, %v276_v61   ;;  %325 = vperm.xlu0 %870, %v275_v62   ;;  %v280_v5 = vld [vmem:[%s1156_s2 + $0x68] sm:$0xff] }
  0x1c   : > { %v242_v58 = vpack.c.bf16 %v218_v55, %v217_v54  ;;  %v882_v3 = vld [vmem:[%s1155_s1 + $0x10] ss:$8 sps:$4 sm:$0xff]   ;;  %v279_v6 = vld [vmem:[%s1156_s2 + $0x60] sm:$0xff]  ;;  %v890_v13 = vld [vmem:[%s1155_s1 + $0x34] ss:$8 sps:$4 sm:$0xff]  }
  0x1d   : > { %770 = vmatpush3.bf16.msra.mxu0 %v237_v22  ;;  %839 = vmatpush3.bf16.msra.mxu1 %v237_v22  ;;  %v883_v4 = vld [vmem:[%s1155_s1 + $0x50] ss:$8 sps:$4 sm:$0xff]   ;;  %v884_v7 = vld [vmem:[%s1155_s1 + $0x24] ss:$8 sps:$4 sm:$0xff]   ;;  %v888_v11 = vld [vmem:[%s1155_s1 + $0x20] ss:$8 sps:$4 sm:$0xff]  }
  0x1e   : > { %771 = vmatprep.subr.bf16.mxu0 %v246_v23  ;;  %832 = vmatprep.subr.bf16.mxu1 %v246_v23  ;;  %v886_v8 = vld [vmem:[%s1155_s1 + $0x64] ss:$8 sps:$4 sm:$0xff]   ;;  %v282_v9 = vld [vmem:[%s1156_s2 + $0x78] sm:$0xff]  ;;  %v281_v10 = vld [vmem:[%s1156_s2 + $0x70] sm:$0xff] }
  0x1f   : > { %340 = vperm.xlu1 %871, %v278_v1   ;;  %335 = vperm.xlu0 %870, %v277_v2   ;;  %v889_v12 = vld [vmem:[%s1155_s1 + $0x60] ss:$8 sps:$4 sm:$0xff]   ;;  %v892_v14 = vld [vmem:[%s1155_s1 + $0x74] ss:$8 sps:$4 sm:$0xff]   ;;  %v894_v15 = vld [vmem:[%s1155_s1 + $0x30] ss:$8 sps:$4 sm:$0xff]  }
  0x20   : > { %v895_v16 = vld [vmem:[%s1155_s1 + $0x70] ss:$8 sps:$4 sm:$0xff]  }
  0x21   : > { %772 = vmatpush3.bf16.msra.mxu0 %v238_v28  ;;  %840 = vmatpush3.bf16.msra.mxu1 %v238_v28 }
  0x22   : > { %773 = vmatprep.subr.bf16.mxu0 %v247_v30  ;;  %833 = vmatprep.subr.bf16.mxu1 %v247_v30 }
  0x23   : > { %350 = vperm.xlu1 %871, %v280_v5   ;;  %345 = vperm.xlu0 %870, %v279_v6  }
  0x25   : > { %774 = vmatpush3.bf16.msra.mxu0 %v239_v36  ;;  %841 = vmatpush3.bf16.msra.mxu1 %v239_v36 }
  0x26   : > { %775 = vmatprep.subr.bf16.mxu0 %v248_v37  ;;  %834 = vmatprep.subr.bf16.mxu1 %v248_v37 }
  0x27   : > { %360 = vperm.xlu1 %871, %v282_v9   ;;  %355 = vperm.xlu0 %870, %v281_v10  }
  0x29   : > { %776 = vmatpush3.bf16.msra.mxu0 %v240_v44  ;;  %842 = vmatpush3.bf16.msra.mxu1 %v240_v44 }
  0x2a   : > { %777 = vmatprep.subr.bf16.mxu0 %v249_v45  ;;  %835 = vmatprep.subr.bf16.mxu1 %v249_v45 }
  0x2d   : > { %778 = vmatpush3.bf16.msra.mxu0 %v241_v52  ;;  %843 = vmatpush3.bf16.msra.mxu1 %v241_v52 }
  0x2e   : > { %779 = vmatprep.subr.bf16.mxu0 %v250_v53  ;;  %836 = vmatprep.subr.bf16.mxu1 %v250_v53 }
  0x31   : > { %780 = vmatpush3.bf16.msra.mxu0 %v242_v58  ;;  %844 = vmatpush3.bf16.msra.mxu1 %v242_v58 }
  0x34   : > { %476 = vmatmul.mubr.bf16.vlgmr.msra.gmra.mrb[0].mxu0 %v872_v59  ;;  %508 = vmatmul.mubr.bf16.vlgmr.msra.gmra.mrb[0].mxu1 %v875_v60 }
  0x35   : > { %483 = vmatprep.mubr.bf16.mxu0 %v878_v63  ;;  %515 = vmatprep.mubr.bf16.mxu1 %v880_v0 }
  0x3c   : > { %484 = vmatmul.mubr.bf16.gmra.mrb[4].mxu0 %v882_v3  ;;  %516 = vmatmul.mubr.bf16.gmra.mrb[4].mxu1 %v883_v4 }
  0x3d   : > { %491 = vmatprep.mubr.bf16.mxu0 %v884_v7  ;;  %523 = vmatprep.mubr.bf16.mxu1 %v886_v8 }
  0x44   : > { %492 = vmatmul.mubr.bf16.gmra.mrb[8].mxu0 %v888_v11  ;;  %524 = vmatmul.mubr.bf16.gmra.mrb[8].mxu1 %v889_v12 }
  0x45   : > { %499 = vmatprep.mubr.bf16.mxu0 %v890_v13  ;;  %531 = vmatprep.mubr.bf16.mxu1 %v892_v14 }
  0x4c   : > { %500 = vmatmul.mubr.bf16.gmra.mrb[12].mxu0 %v894_v15  ;;  %532 = vmatmul.mubr.bf16.gmra.mrb[12].mxu1 %v895_v16 }
  0x88   : > { %v286_v17 = vpop.permute.xlu0 %285  ;;  %v296_v18 = vpop.permute.xlu1 %295 }
  0x8c   : > { %v291_v19 = vpop.permute.xlu0 %290  ;;  %v301_v20 = vpop.permute.xlu1 %300 }
  0x90   : > { %v1095_v21 = vpop.permute.xlu0 %305  ;;  %v1097_v22 = vpop.permute.xlu1 %310 }
  0x96   : > { %v1099_v23 = vpop.permute.xlu0 %315  ;;  %v1101_v24 = vpop.permute.xlu1 %320 }
  0x9a   : > { %v326_v25 = vpop.permute.xlu0 %325  ;;  %v331_v40 = vpop.permute.xlu1 %330 }
  0x9e   : > { %v336_v45 = vpop.permute.xlu0 %335  ;;  %v341_v62 = vpop.permute.xlu1 %340 }
  0xa2   : > { %v346_v3 = vpop.permute.xlu0 %345 }
 0x107   : > { %v781_v26 = vpop.f32.mrb[0].mxu0  ;;  %v805_v27 = vpop.f32.mrb[0].mxu1 }
 0x108   : > { %v782_v28 = vpop.f32.mrb[1].mxu0  ;;  %v806_v29 = vpop.f32.mrb[1].mxu1 }
 0x109   : > { %v783_v30 = vadd.f32 %v782_v28, %v781_v26  ;;  %v807_v31 = vadd.f32 %v806_v29, %v805_v27  ;;  %v784_v32 = vpop.f32.mrb[2].mxu0  ;;  %v808_v33 = vpop.f32.mrb[2].mxu1 }
 0x10a   : > { %v785_v34 = vpop.f32.mrb[3].mxu0  ;;  %v809_v35 = vpop.f32.mrb[3].mxu1 }
 0x10b   : > { %v478_v36 = vadd.f32 %v783_v30, %v286_v17  ;;  %v510_v37 = vadd.f32 %v807_v31, %v326_v25  ;;  %v786_v38 = vadd.f32 %v785_v34, %v784_v32  ;;  %v810_v39 = vadd.f32 %v809_v35, %v808_v33  ;;  %v356_v29 = vpop.permute.xlu0 %355 }
 0x10d   : > { %v749_v41 = vpack.c.bf16 %v478_v36, %v478_v36  ;;  %v757_v42 = vpack.c.bf16 %v510_v37, %v510_v37  ;;  %v481_v43 = vadd.f32 %v786_v38, %v291_v19  ;;  %v513_v44 = vadd.f32 %v810_v39, %v331_v40 }
 0x10f   : > { %605 = vst.msk [vmem:[%s1107_s18] sm:$0xf] %vm604_vm0, %v749_v41  ;;  %613 = vst.msk [vmem:[%s1107_s18 + $0x20] sm:$0xf] %vm604_vm0, %v757_v42  ;;  %v750_v46 = vpack.c.bf16 %v481_v43, %v481_v43  ;;  %v758_v47 = vpack.c.bf16 %v513_v44, %v513_v44  ;;  %v787_v48 = vpop.f32.mrb[4].mxu0  ;;  %v811_v49 = vpop.f32.mrb[4].mxu1 }
 0x110   : > { %v788_v50 = vpop.f32.mrb[5].mxu0  ;;  %v812_v51 = vpop.f32.mrb[5].mxu1 }
 0x111   : > { %606 = vst.msk [vmem:[%s1107_s18 + $0x4] sm:$0xf] %vm604_vm0, %v750_v46  ;;  %614 = vst.msk [vmem:[%s1107_s18 + $0x24] sm:$0xf] %vm604_vm0, %v758_v47  ;;  %v789_v52 = vadd.f32 %v788_v50, %v787_v48  ;;  %v813_v53 = vadd.f32 %v812_v51, %v811_v49  ;;  %v790_v54 = vpop.f32.mrb[6].mxu0  ;;  %v814_v55 = vpop.f32.mrb[6].mxu1 }
 0x112   : > { %v791_v56 = vpop.f32.mrb[7].mxu0  ;;  %v815_v57 = vpop.f32.mrb[7].mxu1 }
 0x113   : > { %v486_v58 = vadd.f32 %v789_v52, %v296_v18  ;;  %v518_v59 = vadd.f32 %v813_v53, %v336_v45  ;;  %v792_v60 = vadd.f32 %v791_v56, %v790_v54  ;;  %v816_v61 = vadd.f32 %v815_v57, %v814_v55 }
 0x115   : > { %v751_v63 = vpack.c.bf16 %v486_v58, %v486_v58  ;;  %v759_v0 = vpack.c.bf16 %v518_v59, %v518_v59  ;;  %v489_v1 = vadd.f32 %v792_v60, %v301_v20  ;;  %v521_v2 = vadd.f32 %v816_v61, %v341_v62  ;;  %v351_v20 = vpop.permute.xlu1 %350 }
 0x117   : > { %607 = vst.msk [vmem:[%s1107_s18 + $0x8] sm:$0xf] %vm604_vm0, %v751_v63  ;;  %615 = vst.msk [vmem:[%s1107_s18 + $0x28] sm:$0xf] %vm604_vm0, %v759_v0  ;;  %v752_v4 = vpack.c.bf16 %v489_v1, %v489_v1  ;;  %v760_v5 = vpack.c.bf16 %v521_v2, %v521_v2  ;;  %v793_v6 = vpop.f32.mrb[8].mxu0  ;;  %v817_v7 = vpop.f32.mrb[8].mxu1 }
 0x118   : > { %v794_v8 = vpop.f32.mrb[9].mxu0  ;;  %v818_v9 = vpop.f32.mrb[9].mxu1 }
 0x119   : > { %608 = vst.msk [vmem:[%s1107_s18 + $0xc] sm:$0xf] %vm604_vm0, %v752_v4  ;;  %616 = vst.msk [vmem:[%s1107_s18 + $0x2c] sm:$0xf] %vm604_vm0, %v760_v5  ;;  %v795_v10 = vadd.f32 %v794_v8, %v793_v6  ;;  %v819_v11 = vadd.f32 %v818_v9, %v817_v7  ;;  %v796_v12 = vpop.f32.mrb[10].mxu0  ;;  %v820_v13 = vpop.f32.mrb[10].mxu1 }
 0x11a   : > { %v797_v14 = vpop.f32.mrb[11].mxu0  ;;  %v821_v15 = vpop.f32.mrb[11].mxu1 }
 0x11b   : > { %v494_v16 = vadd.f32 %v795_v10, %v1095_v21  ;;  %v526_v17 = vadd.f32 %v819_v11, %v346_v3  ;;  %v798_v18 = vadd.f32 %v797_v14, %v796_v12  ;;  %v822_v19 = vadd.f32 %v821_v15, %v820_v13  ;;  %v361_v44 = vpop.permute.xlu1 %360 }
 0x11d   : > { %v753_v25 = vpack.c.bf16 %v494_v16, %v494_v16  ;;  %v761_v26 = vpack.c.bf16 %v526_v17, %v526_v17  ;;  %v497_v27 = vadd.f32 %v798_v18, %v1097_v22  ;;  %v529_v28 = vadd.f32 %v822_v19, %v351_v20 }
 0x11f   : > { %609 = vst.msk [vmem:[%s1107_s18 + $0x10] sm:$0xf] %vm604_vm0, %v753_v25  ;;  %617 = vst.msk [vmem:[%s1107_s18 + $0x30] sm:$0xf] %vm604_vm0, %v761_v26  ;;  %v754_v30 = vpack.c.bf16 %v497_v27, %v497_v27  ;;  %v762_v31 = vpack.c.bf16 %v529_v28, %v529_v28  ;;  %v799_v32 = vpop.f32.mrb[12].mxu0  ;;  %v823_v21 = vpop.f32.mrb[12].mxu1 }
 0x120   : > { %v800_v33 = vpop.f32.mrb[13].mxu0  ;;  %v824_v34 = vpop.f32.mrb[13].mxu1 }
 0x121   : > { %610 = vst.msk [vmem:[%s1107_s18 + $0x14] sm:$0xf] %vm604_vm0, %v754_v30  ;;  %618 = vst.msk [vmem:[%s1107_s18 + $0x34] sm:$0xf] %vm604_vm0, %v762_v31  ;;  %v801_v35 = vadd.f32 %v800_v33, %v799_v32  ;;  %v825_v22 = vadd.f32 %v824_v34, %v823_v21  ;;  %v802_v36 = vpop.f32.mrb[14].mxu0  ;;  %v826_v37 = vpop.f32.mrb[14].mxu1 }
 0x122   : > { %v803_v38 = vpop.f32.mrb[15].mxu0  ;;  %v827_v39 = vpop.f32.mrb[15].mxu1 }
 0x123   : > { %v502_v40 = vadd.f32 %v801_v35, %v1099_v23  ;;  %v534_v41 = vadd.f32 %v825_v22, %v356_v29  ;;  %v804_v42 = vadd.f32 %v803_v38, %v802_v36  ;;  %v828_v43 = vadd.f32 %v827_v39, %v826_v37 }
 0x125   : > { %v755_v45 = vpack.c.bf16 %v502_v40, %v502_v40  ;;  %v763_v46 = vpack.c.bf16 %v534_v41, %v534_v41  ;;  %v505_v47 = vadd.f32 %v804_v42, %v1101_v24  ;;  %v537_v48 = vadd.f32 %v828_v43, %v361_v44 }
 0x127   : > { %611 = vst.msk [vmem:[%s1107_s18 + $0x18] sm:$0xf] %vm604_vm0, %v755_v45  ;;  %619 = vst.msk [vmem:[%s1107_s18 + $0x38] sm:$0xf] %vm604_vm0, %v763_v46  ;;  %v756_v49 = vpack.c.bf16 %v505_v47, %v505_v47  ;;  %v764_v50 = vpack.c.bf16 %v537_v48, %v537_v48 }
 0x129   : > { %612 = vst.msk [vmem:[%s1107_s18 + $0x1c] sm:$0xf] %vm604_vm0, %v756_v49  ;;  %620 = vst.msk [vmem:[%s1107_s18 + $0x3c] sm:$0xf] %vm604_vm0, %v764_v50 }
 0x12a PF: > { %s13_s14 = sadd.s32 1, %s918_s14   ;;  %s1158_s12 = smov %s914_s13 }
 0x12b   : > { %p10_p5 = scmp.ge.s32.totalorder %s13_s14, 4   ;;  %s1159_s13 = smov %s1161_s15 }
 0x12d   :  { %12 = sbr.rel (!%p10_p5) target bundleno = 2 (0x2), region = 62 }

</bundles_post_ra>
